<compile_context>
chip_gen: v7x
topology: tpu7x:2x2x1
jax: 0.10.0
libtpu: 0.0.40
codegen_flags: <defaults>
</compile_context>

<pallas_src>
import functools

import jax
import jax.numpy as jnp
from jax.experimental import pallas as pl
from jax.experimental.pallas import tpu as pltpu


def _bn_relu(h, gamma, beta, eps=1e-5):
    # BatchNorm1d in training mode: batch statistics, biased variance (PyTorch).
    mean = jnp.mean(h, axis=0, keepdims=True)
    var = jnp.mean((h - mean) ** 2, axis=0, keepdims=True)
    hn = (h - mean) * jax.lax.rsqrt(var + eps)
    return jnp.maximum(hn * gamma + beta, 0.0)


def _vicreg_fused_kernel(
    x_ref,                       # (1, N, TK)  f32   view-v, K-tile-k of input
    wf_ref,                      # (TK, F)     bf16  backbone weight K-tile
    bf_ref,                      # (1, F)      f32
    w1_ref, b1_ref, g1_ref, be1_ref,
    w2_ref, b2_ref, g2_ref, be2_ref,
    w3_ref, b3_ref,
    r_ref,                       # (1, N, F)   f32   backbone features (output)
    loss_ref,                    # (3,)        f32   (sim, var, cov) in SMEM
    racc_ref,                    # (N, F)      f32   VMEM scratch: K accumulator
    zprev_ref,                   # (N, D)      f32   VMEM scratch: z of view 0
    lacc_ref,                    # (3,)        f32   SMEM scratch: loss partials
):
    v = pl.program_id(0)
    k = pl.program_id(1)
    nk = pl.num_programs(1)

    # ---- backbone: r = x @ Wf (+ bf), K-tiled f32 accumulation --------------
    @pl.when(k == 0)
    def _():
        racc_ref[...] = jnp.zeros_like(racc_ref)

    x_blk = x_ref[0].astype(jnp.bfloat16)
    racc_ref[...] += jnp.dot(x_blk, wf_ref[...],
                             preferred_element_type=jnp.float32)

    # ---- on the last K-tile: projector MLP + fused VICReg loss --------------
    @pl.when(k == nk - 1)
    def _():
        r = racc_ref[...] + bf_ref[...]
        r_ref[0] = r

        h1 = jnp.dot(r.astype(jnp.bfloat16), w1_ref[...],
                     preferred_element_type=jnp.float32) + b1_ref[...]
        h1 = _bn_relu(h1, g1_ref[...], be1_ref[...])
        h2 = jnp.dot(h1.astype(jnp.bfloat16), w2_ref[...],
                     preferred_element_type=jnp.float32) + b2_ref[...]
        h2 = _bn_relu(h2, g2_ref[...], be2_ref[...])
        z = jnp.dot(h2.astype(jnp.bfloat16), w3_ref[...],
                    preferred_element_type=jnp.float32) + b3_ref[...]

        n, d = z.shape

        # variance term (unbiased variance, torch.var default), all f32
        zc = z - jnp.mean(z, axis=0, keepdims=True)
        var = jnp.sum(zc * zc, axis=0, keepdims=True) / (n - 1)
        std = jnp.sqrt(var + 1e-4)
        var_part = jnp.mean(jnp.maximum(1.0 - std, 0.0))

        # covariance term via the NxN Gram identity:
        #   sum(cov^2) = ||Zc @ Zc.T||_F^2 / (N-1)^2 ;  off-diag = total - sum(var^2)
        zb = zc.astype(jnp.bfloat16)
        gram = jax.lax.dot_general(zb, zb, (((1,), (1,)), ((), ())),
                                   preferred_element_type=jnp.float32)
        cov_sq = jnp.sum(gram * gram) / ((n - 1) * (n - 1))
        cov_part = (cov_sq - jnp.sum(var * var)) / d

        @pl.when(v == 0)
        def _():
            zprev_ref[...] = z            # keep z1 resident for the MSE term
            lacc_ref[1] = var_part
            lacc_ref[2] = cov_part

        @pl.when(v == 1)
        def _():
            dz = z - zprev_ref[...]
            loss_ref[0] = jnp.mean(dz * dz)                 # invariance (MSE)
            loss_ref[1] = lacc_ref[1] + var_part            # variance
            loss_ref[2] = lacc_ref[2] + cov_part            # covariance


def _vmem_limit_bytes(n, tk, f, hd, d):
    # Double-buffered blocks + resident weights + outputs + scratch, with
    # generous headroom for projector temporaries; capped at v7x's 64 MiB.
    est = 2 * (n * tk * 4)                              # x block (f32)
    est += 2 * (tk * f * 2)                             # Wf K-tile (bf16)
    est += 2 * (f * hd + hd * hd + hd * d) * 2          # projector weights (bf16)
    est += 2 * (f + 3 * hd + d) * 4 * 4                 # biases + BN params (f32)
    est += 2 * (n * f * 4)                              # r output block
    est += n * f * 4 + n * d * 4                        # VMEM scratch
    est += 4 * (n * hd + n * d + n * n) * 4             # h1/h2/z/gram temporaries
    return int(min(2 * est + (8 << 20), 64 << 20))


@functools.partial(jax.jit, static_argnames=("tk",))
def vicreg_forward(X1, X2, params, sim_w=25.0, var_w=25.0, cov_w=1.0, tk=512):
    wf, bf, w1, b1, g1, be1, w2, b2, g2, be2, w3, b3 = params
    N = X1.shape[0]
    K, F = wf.shape
    Hd = w1.shape[1]
    D = w3.shape[1]
    tk = min(tk, K)
    assert K % tk == 0, "flattened input dim must be divisible by the K tile"
    nk = K // tk

    # Both views stacked: (2, N, K); the view axis is the leading grid axis.
    x = jnp.stack([X1.reshape(N, -1), X2.reshape(N, -1)]).astype(jnp.float32)

    # Weights ride the MXU in bf16 (halves resident VMEM + HBM traffic);
    # biases and BN affine params stay f32.
    wf_b = wf.astype(jnp.bfloat16)
    w1_b = w1.astype(jnp.bfloat16)
    w2_b = w2.astype(jnp.bfloat16)
    w3_b = w3.astype(jnp.bfloat16)

    const = lambda v, k: (0, 0)          # resident across both views & all K-tiles
    weight_specs = [
        pl.BlockSpec((tk, F), lambda v, k: (k, 0)),                   # Wf (K-tiled)
        pl.BlockSpec((1, F), const),                                  # bf
        pl.BlockSpec((F, Hd), const), pl.BlockSpec((1, Hd), const),   # W1, b1
        pl.BlockSpec((1, Hd), const), pl.BlockSpec((1, Hd), const),   # g1, be1
        pl.BlockSpec((Hd, Hd), const), pl.BlockSpec((1, Hd), const),  # W2, b2
        pl.BlockSpec((1, Hd), const), pl.BlockSpec((1, Hd), const),   # g2, be2
        pl.BlockSpec((Hd, D), const), pl.BlockSpec((1, D), const),    # W3, b3
    ]

    grid_spec = pltpu.PrefetchScalarGridSpec(
        num_scalar_prefetch=0,
        grid=(2, nk),
        in_specs=[pl.BlockSpec((1, N, tk), lambda v, k: (v, 0, k))] + weight_specs,
        out_specs=(
            pl.BlockSpec((1, N, F), lambda v, k: (v, 0, 0)),
            pl.BlockSpec((3,), lambda v, k: (0,),
                         memory_space=pltpu.MemorySpace.SMEM),
        ),
        scratch_shapes=[
            pltpu.VMEM((N, F), jnp.float32),    # backbone K-accumulator
            pltpu.VMEM((N, D), jnp.float32),    # z of view 0
            pltpu.SMEM((3,), jnp.float32),      # loss partial sums
        ],
    )

    r, comps = pl.pallas_call(
        _vicreg_fused_kernel,
        out_shape=(jax.ShapeDtypeStruct((2, N, F), jnp.float32),
                   jax.ShapeDtypeStruct((3,), jnp.float32)),
        grid_spec=grid_spec,
        compiler_params=pltpu.CompilerParams(
            # view axis carries fused-loss state -> "arbitrary"; K is a reduction
            dimension_semantics=("arbitrary", "arbitrary"),
            vmem_limit_bytes=_vmem_limit_bytes(N, tk, F, Hd, D),
        ),
    )(x, wf_b, bf, w1_b, b1, g1, be1, w2_b, b2, g2, be2, w3_b, b3)

    sim_loss, var_loss, cov_loss = comps[0], comps[1], comps[2]
    loss = sim_w * sim_loss + var_w * var_loss + cov_w * cov_loss
    loss = loss / (sim_w + var_w + cov_w)
    return loss, (sim_loss, var_loss, cov_loss), r[0], r[1]


# ----------------------------------------------------------------------------
# Pure-JAX reference mirroring the kernel's precision choices (bf16 matmuls,
# f32 accumulation, Gram identity — exactly equal to the DxD covariance form
# in exact arithmetic).
# ----------------------------------------------------------------------------
def _ref_forward(X1, X2, params, sim_w=25.0, var_w=25.0, cov_w=1.0):
    wf, bf, w1, b1, g1, be1, w2, b2, g2, be2, w3, b3 = params

    def bm(a, b):
        return jnp.dot(a.astype(jnp.bfloat16), b.astype(jnp.bfloat16),
                       preferred_element_type=jnp.float32)

    def bn_relu(h, g, be):
        m = h.mean(0, keepdims=True)
        v = ((h - m) ** 2).mean(0, keepdims=True)
        return jnp.maximum((h - m) * jax.lax.rsqrt(v + 1e-5) * g + be, 0.0)

    def proj(x):
        r = bm(x.reshape(x.shape[0], -1), wf) + bf
        h = bn_relu(bm(r, w1) + b1, g1, be1)
        h = bn_relu(bm(h, w2) + b2, g2, be2)
        return r, bm(h, w3) + b3

    r1, z1 = proj(X1)
    r2, z2 = proj(X2)
    N, D = z1.shape
    sim = jnp.mean((z1 - z2) ** 2)
    z1c = z1 - z1.mean(0)
    z2c = z2 - z2.mean(0)
    v1 = (z1c ** 2).sum(0) / (N - 1)
    v2 = (z2c ** 2).sum(0) / (N - 1)
    var = (jnp.mean(jnp.maximum(1 - jnp.sqrt(v1 + 1e-4), 0)) +
           jnp.mean(jnp.maximum(1 - jnp.sqrt(v2 + 1e-4), 0)))

    def cov_term(zc, v):
        zb = zc.astype(jnp.bfloat16)
        g = jnp.dot(zb, zb.T, preferred_element_type=jnp.float32)
        return (jnp.sum(g * g) / ((N - 1) ** 2) - jnp.sum(v * v)) / D

    cov = cov_term(z1c, v1) + cov_term(z2c, v2)
    loss = (sim_w * sim + var_w * var + cov_w * cov) / (sim_w + var_w + cov_w)
    return loss, (sim, var, cov), r1, r2


# ----------------------------------------------------------------------------
if __name__ == "__main__":
    # Small, hardware-friendly demo shapes: batch=8 (sublane-aligned),
    # images 4x16x16 (NCHW) -> flattened 1024, feature/hidden/output dims 128
    # (lane-aligned), K tile 512 -> grid (2 views, 2 K-tiles).
    N, C, H, W = 8, 4, 16, 16
    feat_dim, hid_dim, out_dim = 128, 128, 128
    in_dim = C * H * W

    key = jax.random.PRNGKey(0)
    ks = jax.random.split(key, 8)
    X1 = jax.random.normal(ks[0], (N, C, H, W), jnp.float32)
    X2 = jax.random.normal(ks[1], (N, C, H, W), jnp.float32)

    def lin(k, din, dout):
        w = jax.random.normal(k, (din, dout), jnp.float32) * (1.0 / jnp.sqrt(din))
        b = jnp.full((1, dout), 0.01, jnp.float32)
        return w, b

    wf, bf = lin(ks[2], in_dim, feat_dim)
    w1, b1 = lin(ks[3], feat_dim, hid_dim)
    w2, b2 = lin(ks[4], hid_dim, hid_dim)
    w3, b3 = lin(ks[5], hid_dim, out_dim)
    g1 = jnp.ones((1, hid_dim), jnp.float32); be1 = jnp.zeros((1, hid_dim), jnp.float32)
    g2 = jnp.ones((1, hid_dim), jnp.float32); be2 = jnp.zeros((1, hid_dim), jnp.float32)

    params = (wf, bf, w1, b1, g1, be1, w2, b2, g2, be2, w3, b3)

    loss, (sim, var, cov), r1, r2 = vicreg_forward(X1, X2, params, tk=512)
    jax.block_until_ready((loss, sim, var, cov, r1, r2))

    # sanity check vs the mirrored pure-JAX reference
    rl, (rs, rv, rc), rr1, rr2 = _ref_forward(X1, X2, params)
    assert jnp.allclose(loss, rl, rtol=5e-3, atol=5e-3), (loss, rl)
    assert jnp.allclose(sim, rs, rtol=5e-3, atol=5e-3), (sim, rs)
    assert jnp.allclose(var, rv, rtol=5e-3, atol=5e-3), (var, rv)
    assert jnp.allclose(cov, rc, rtol=5e-3, atol=1e-2), (cov, rc)
    assert jnp.allclose(r1, rr1, rtol=5e-3, atol=5e-3)
    assert jnp.allclose(r2, rr2, rtol=5e-3, atol=5e-3)

    print("KERNEL_OK")
</pallas_src>

<mosaic_0001>
module attributes {stable_mosaic.version = 11 : i64} {
  func.func @_vicreg_fused_kernel(%arg0: i32, %arg1: i32, %arg2: memref<1x8x512xf32, #tpu.memory_space<vmem>>, %arg3: memref<512x128xbf16, #tpu.memory_space<vmem>>, %arg4: memref<1x128xf32, #tpu.memory_space<vmem>>, %arg5: memref<128x128xbf16, #tpu.memory_space<vmem>>, %arg6: memref<1x128xf32, #tpu.memory_space<vmem>>, %arg7: memref<1x128xf32, #tpu.memory_space<vmem>>, %arg8: memref<1x128xf32, #tpu.memory_space<vmem>>, %arg9: memref<128x128xbf16, #tpu.memory_space<vmem>>, %arg10: memref<1x128xf32, #tpu.memory_space<vmem>>, %arg11: memref<1x128xf32, #tpu.memory_space<vmem>>, %arg12: memref<1x128xf32, #tpu.memory_space<vmem>>, %arg13: memref<128x128xbf16, #tpu.memory_space<vmem>>, %arg14: memref<1x128xf32, #tpu.memory_space<vmem>>, %arg15: memref<1x8x128xf32, #tpu.memory_space<vmem>>, %arg16: memref<3xf32, #tpu.memory_space<smem>>, %arg17: memref<8x128xf32, #tpu.memory_space<vmem>>, %arg18: memref<8x128xf32, #tpu.memory_space<vmem>>, %arg19: memref<3xf32, #tpu.memory_space<smem>>) attributes {dimension_semantics = [#tpu.dimension_semantics<arbitrary>, #tpu.dimension_semantics<arbitrary>], iteration_bounds = array<i64: 2, 2>, scalar_prefetch = 0 : i64, scratch_operands = 3 : i64, tpu.core_type = #tpu.core_type<tc>, window_params = [{transform_indices = @transform_0, window_bounds = array<i64: 1, 8, 512>}, {transform_indices = @transform_1, window_bounds = array<i64: 512, 128>}, {pipeline_mode = #tpu.pipeline_mode<synchronous>, transform_indices = @transform_2, window_bounds = array<i64: 1, 128>}, {pipeline_mode = #tpu.pipeline_mode<synchronous>, transform_indices = @transform_3, window_bounds = array<i64: 128, 128>}, {pipeline_mode = #tpu.pipeline_mode<synchronous>, transform_indices = @transform_4, window_bounds = array<i64: 1, 128>}, {pipeline_mode = #tpu.pipeline_mode<synchronous>, transform_indices = @transform_5, window_bounds = array<i64: 1, 128>}, {pipeline_mode = #tpu.pipeline_mode<synchronous>, transform_indices = @transform_6, window_bounds = array<i64: 1, 128>}, {pipeline_mode = #tpu.pipeline_mode<synchronous>, transform_indices = @transform_7, window_bounds = array<i64: 128, 128>}, {pipeline_mode = #tpu.pipeline_mode<synchronous>, transform_indices = @transform_8, window_bounds = array<i64: 1, 128>}, {pipeline_mode = #tpu.pipeline_mode<synchronous>, transform_indices = @transform_9, window_bounds = array<i64: 1, 128>}, {pipeline_mode = #tpu.pipeline_mode<synchronous>, transform_indices = @transform_10, window_bounds = array<i64: 1, 128>}, {pipeline_mode = #tpu.pipeline_mode<synchronous>, transform_indices = @transform_11, window_bounds = array<i64: 128, 128>}, {pipeline_mode = #tpu.pipeline_mode<synchronous>, transform_indices = @transform_12, window_bounds = array<i64: 1, 128>}, {transform_indices = @transform_13, window_bounds = array<i64: 1, 8, 128>}, {transform_indices = @transform_14, window_bounds = array<i64: 3>}]} {
    %c0_i32 = arith.constant 0 : i32
    %0 = arith.cmpi eq, %arg1, %c0_i32 : i32
    %1 = arith.extui %0 : i1 to i32
    %c0_i32_0 = arith.constant 0 : i32
    %2 = arith.cmpi ne, %1, %c0_i32_0 : i32
    scf.if %2 {
      %cst_10 = arith.constant 0.000000e+00 : f32
      %14 = vector.broadcast %cst_10 : f32 to vector<8x128xf32>
      %c0_11 = arith.constant 0 : index
      %c0_12 = arith.constant 0 : index
      %15 = vector.load %arg17[%c0_11, %c0_12] : memref<8x128xf32, #tpu.memory_space<vmem>>, vector<8x128xf32>
      tpu.vector_store %arg17[%c0_11, %c0_12], %14 {strides = array<i32>} : memref<8x128xf32, #tpu.memory_space<vmem>>, vector<8x128xf32>,
    } else {
    }
    %c0 = arith.constant 0 : index
    %c0_1 = arith.constant 0 : index
    %c0_2 = arith.constant 0 : index
    %3 = vector.load %arg2[%c0, %c0_1, %c0_2] : memref<1x8x512xf32, #tpu.memory_space<vmem>>, vector<1x8x512xf32>
    %4 = vector.shape_cast %3 : vector<1x8x512xf32> to vector<8x512xf32>
    %5 = arith.truncf %4 : vector<8x512xf32> to vector<8x512xbf16>
    %c0_3 = arith.constant 0 : index
    %c0_4 = arith.constant 0 : index
    %6 = vector.load %arg17[%c0_3, %c0_4] : memref<8x128xf32, #tpu.memory_space<vmem>>, vector<8x128xf32>
    %c0_5 = arith.constant 0 : index
    %c0_6 = arith.constant 0 : index
    %7 = vector.load %arg3[%c0_5, %c0_6] : memref<512x128xbf16, #tpu.memory_space<vmem>>, vector<512x128xbf16>
    %cst = arith.constant dense<0.000000e+00> : vector<8x128xf32>
    %8 = tpu.matmul %5, %7, %cst {dimension_numbers = #tpu.dot_dimension_numbers<[1], [0], [0], [1], [0, 0, 1, 1], [], []>} : vector<8x512xbf16>, vector<512x128xbf16>, vector<8x128xf32> -> vector<8x128xf32>
    %9 = arith.addf %6, %8 : vector<8x128xf32>
    %c0_7 = arith.constant 0 : index
    %c0_8 = arith.constant 0 : index
    %10 = vector.load %arg17[%c0_7, %c0_8] : memref<8x128xf32, #tpu.memory_space<vmem>>, vector<8x128xf32>
    tpu.vector_store %arg17[%c0_7, %c0_8], %9 {strides = array<i32>} : memref<8x128xf32, #tpu.memory_space<vmem>>, vector<8x128xf32>,
    %c1_i32 = arith.constant 1 : i32
    %11 = arith.cmpi eq, %arg1, %c1_i32 : i32
    %12 = arith.extui %11 : i1 to i32
    %c0_i32_9 = arith.constant 0 : i32
    %13 = arith.cmpi ne, %12, %c0_i32_9 : i32
    scf.if %13 {
      %c0_10 = arith.constant 0 : index
      %c0_11 = arith.constant 0 : index
      %14 = vector.load %arg17[%c0_10, %c0_11] : memref<8x128xf32, #tpu.memory_space<vmem>>, vector<8x128xf32>
      %c0_12 = arith.constant 0 : index
      %c0_13 = arith.constant 0 : index
      %15 = vector.load %arg4[%c0_12, %c0_13] : memref<1x128xf32, #tpu.memory_space<vmem>>, vector<1x128xf32>
      %16 = vector.broadcast %15 : vector<1x128xf32> to vector<8x128xf32>
      %17 = arith.addf %14, %16 : vector<8x128xf32>
      %c0_14 = arith.constant 0 : index
      %c0_15 = arith.constant 0 : index
      %c0_16 = arith.constant 0 : index
      %18 = vector.load %arg15[%c0_14, %c0_15, %c0_16] : memref<1x8x128xf32, #tpu.memory_space<vmem>>, vector<1x8x128xf32>
      %19 = vector.shape_cast %18 : vector<1x8x128xf32> to vector<8x128xf32>
      %20 = vector.shape_cast %17 : vector<8x128xf32> to vector<1x8x128xf32>
      tpu.vector_store %arg15[%c0_14, %c0_15, %c0_16], %20 {strides = array<i32>} : memref<1x8x128xf32, #tpu.memory_space<vmem>>, vector<1x8x128xf32>,
      %21 = arith.truncf %17 : vector<8x128xf32> to vector<8x128xbf16>
      %c0_17 = arith.constant 0 : index
      %c0_18 = arith.constant 0 : index
      %22 = vector.load %arg5[%c0_17, %c0_18] : memref<128x128xbf16, #tpu.memory_space<vmem>>, vector<128x128xbf16>
      %cst_19 = arith.constant dense<0.000000e+00> : vector<8x128xf32>
      %23 = tpu.matmul %21, %22, %cst_19 {dimension_numbers = #tpu.dot_dimension_numbers<[1], [0], [0], [1], [0, 0, 1, 1], [], []>} : vector<8x128xbf16>, vector<128x128xbf16>, vector<8x128xf32> -> vector<8x128xf32>
      %c0_20 = arith.constant 0 : index
      %c0_21 = arith.constant 0 : index
      %24 = vector.load %arg6[%c0_20, %c0_21] : memref<1x128xf32, #tpu.memory_space<vmem>>, vector<1x128xf32>
      %25 = vector.broadcast %24 : vector<1x128xf32> to vector<8x128xf32>
      %26 = arith.addf %23, %25 : vector<8x128xf32>
      %c0_22 = arith.constant 0 : index
      %c0_23 = arith.constant 0 : index
      %27 = vector.load %arg7[%c0_22, %c0_23] : memref<1x128xf32, #tpu.memory_space<vmem>>, vector<1x128xf32>
      %c0_24 = arith.constant 0 : index
      %c0_25 = arith.constant 0 : index
      %28 = vector.load %arg8[%c0_24, %c0_25] : memref<1x128xf32, #tpu.memory_space<vmem>>, vector<1x128xf32>
      %cst_26 = arith.constant dense<0.000000e+00> : vector<128xf32>
      %29 = vector.multi_reduction <add>, %26, %cst_26 [0] : vector<8x128xf32> to vector<128xf32>
      %30 = vector.shape_cast %29 : vector<128xf32> to vector<1x128xf32>
      %cst_27 = arith.constant 8.000000e+00 : f32
      %31 = vector.broadcast %cst_27 : f32 to vector<1x128xf32>
      %32 = arith.divf %30, %31 : vector<1x128xf32>
      %33 = vector.broadcast %32 : vector<1x128xf32> to vector<8x128xf32>
      %34 = arith.subf %26, %33 : vector<8x128xf32>
      %35 = arith.mulf %34, %34 : vector<8x128xf32>
      %cst_28 = arith.constant dense<0.000000e+00> : vector<128xf32>
      %36 = vector.multi_reduction <add>, %35, %cst_28 [0] : vector<8x128xf32> to vector<128xf32>
      %37 = vector.shape_cast %36 : vector<128xf32> to vector<1x128xf32>
      %cst_29 = arith.constant 8.000000e+00 : f32
      %38 = vector.broadcast %cst_29 : f32 to vector<1x128xf32>
      %39 = arith.divf %37, %38 : vector<1x128xf32>
      %40 = vector.broadcast %32 : vector<1x128xf32> to vector<8x128xf32>
      %41 = arith.subf %26, %40 : vector<8x128xf32>
      %cst_30 = arith.constant 9.99999974E-6 : f32
      %42 = vector.broadcast %cst_30 : f32 to vector<1x128xf32>
      %43 = arith.addf %39, %42 : vector<1x128xf32>
      %44 = math.rsqrt %43 : vector<1x128xf32>
      %45 = vector.broadcast %44 : vector<1x128xf32> to vector<8x128xf32>
      %46 = arith.mulf %41, %45 : vector<8x128xf32>
      %47 = vector.broadcast %27 : vector<1x128xf32> to vector<8x128xf32>
      %48 = arith.mulf %46, %47 : vector<8x128xf32>
      %49 = vector.broadcast %28 : vector<1x128xf32> to vector<8x128xf32>
      %50 = arith.addf %48, %49 : vector<8x128xf32>
      %cst_31 = arith.constant 0.000000e+00 : f32
      %51 = vector.broadcast %cst_31 : f32 to vector<8x128xf32>
      %52 = arith.maximumf %50, %51 : vector<8x128xf32>
      %53 = arith.truncf %52 : vector<8x128xf32> to vector<8x128xbf16>
      %c0_32 = arith.constant 0 : index
      %c0_33 = arith.constant 0 : index
      %54 = vector.load %arg9[%c0_32, %c0_33] : memref<128x128xbf16, #tpu.memory_space<vmem>>, vector<128x128xbf16>
      %cst_34 = arith.constant dense<0.000000e+00> : vector<8x128xf32>
      %55 = tpu.matmul %53, %54, %cst_34 {dimension_numbers = #tpu.dot_dimension_numbers<[1], [0], [0], [1], [0, 0, 1, 1], [], []>} : vector<8x128xbf16>, vector<128x128xbf16>, vector<8x128xf32> -> vector<8x128xf32>
      %c0_35 = arith.constant 0 : index
      %c0_36 = arith.constant 0 : index
      %56 = vector.load %arg10[%c0_35, %c0_36] : memref<1x128xf32, #tpu.memory_space<vmem>>, vector<1x128xf32>
      %57 = vector.broadcast %56 : vector<1x128xf32> to vector<8x128xf32>
      %58 = arith.addf %55, %57 : vector<8x128xf32>
      %c0_37 = arith.constant 0 : index
      %c0_38 = arith.constant 0 : index
      %59 = vector.load %arg11[%c0_37, %c0_38] : memref<1x128xf32, #tpu.memory_space<vmem>>, vector<1x128xf32>
      %c0_39 = arith.constant 0 : index
      %c0_40 = arith.constant 0 : index
      %60 = vector.load %arg12[%c0_39, %c0_40] : memref<1x128xf32, #tpu.memory_space<vmem>>, vector<1x128xf32>
      %cst_41 = arith.constant dense<0.000000e+00> : vector<128xf32>
      %61 = vector.multi_reduction <add>, %58, %cst_41 [0] : vector<8x128xf32> to vector<128xf32>
      %62 = vector.shape_cast %61 : vector<128xf32> to vector<1x128xf32>
      %cst_42 = arith.constant 8.000000e+00 : f32
      %63 = vector.broadcast %cst_42 : f32 to vector<1x128xf32>
      %64 = arith.divf %62, %63 : vector<1x128xf32>
      %65 = vector.broadcast %64 : vector<1x128xf32> to vector<8x128xf32>
      %66 = arith.subf %58, %65 : vector<8x128xf32>
      %67 = arith.mulf %66, %66 : vector<8x128xf32>
      %cst_43 = arith.constant dense<0.000000e+00> : vector<128xf32>
      %68 = vector.multi_reduction <add>, %67, %cst_43 [0] : vector<8x128xf32> to vector<128xf32>
      %69 = vector.shape_cast %68 : vector<128xf32> to vector<1x128xf32>
      %cst_44 = arith.constant 8.000000e+00 : f32
      %70 = vector.broadcast %cst_44 : f32 to vector<1x128xf32>
      %71 = arith.divf %69, %70 : vector<1x128xf32>
      %72 = vector.broadcast %64 : vector<1x128xf32> to vector<8x128xf32>
      %73 = arith.subf %58, %72 : vector<8x128xf32>
      %cst_45 = arith.constant 9.99999974E-6 : f32
      %74 = vector.broadcast %cst_45 : f32 to vector<1x128xf32>
      %75 = arith.addf %71, %74 : vector<1x128xf32>
      %76 = math.rsqrt %75 : vector<1x128xf32>
      %77 = vector.broadcast %76 : vector<1x128xf32> to vector<8x128xf32>
      %78 = arith.mulf %73, %77 : vector<8x128xf32>
      %79 = vector.broadcast %59 : vector<1x128xf32> to vector<8x128xf32>
      %80 = arith.mulf %78, %79 : vector<8x128xf32>
      %81 = vector.broadcast %60 : vector<1x128xf32> to vector<8x128xf32>
      %82 = arith.addf %80, %81 : vector<8x128xf32>
      %cst_46 = arith.constant 0.000000e+00 : f32
      %83 = vector.broadcast %cst_46 : f32 to vector<8x128xf32>
      %84 = arith.maximumf %82, %83 : vector<8x128xf32>
      %85 = arith.truncf %84 : vector<8x128xf32> to vector<8x128xbf16>
      %c0_47 = arith.constant 0 : index
      %c0_48 = arith.constant 0 : index
      %86 = vector.load %arg13[%c0_47, %c0_48] : memref<128x128xbf16, #tpu.memory_space<vmem>>, vector<128x128xbf16>
      %cst_49 = arith.constant dense<0.000000e+00> : vector<8x128xf32>
      %87 = tpu.matmul %85, %86, %cst_49 {dimension_numbers = #tpu.dot_dimension_numbers<[1], [0], [0], [1], [0, 0, 1, 1], [], []>} : vector<8x128xbf16>, vector<128x128xbf16>, vector<8x128xf32> -> vector<8x128xf32>
      %c0_50 = arith.constant 0 : index
      %c0_51 = arith.constant 0 : index
      %88 = vector.load %arg14[%c0_50, %c0_51] : memref<1x128xf32, #tpu.memory_space<vmem>>, vector<1x128xf32>
      %89 = vector.broadcast %88 : vector<1x128xf32> to vector<8x128xf32>
      %90 = arith.addf %87, %89 : vector<8x128xf32>
      %cst_52 = arith.constant dense<0.000000e+00> : vector<128xf32>
      %91 = vector.multi_reduction <add>, %90, %cst_52 [0] : vector<8x128xf32> to vector<128xf32>
      %92 = vector.shape_cast %91 : vector<128xf32> to vector<1x128xf32>
      %cst_53 = arith.constant 8.000000e+00 : f32
      %93 = vector.broadcast %cst_53 : f32 to vector<1x128xf32>
      %94 = arith.divf %92, %93 : vector<1x128xf32>
      %95 = vector.broadcast %94 : vector<1x128xf32> to vector<8x128xf32>
      %96 = arith.subf %90, %95 : vector<8x128xf32>
      %97 = arith.mulf %96, %96 : vector<8x128xf32>
      %cst_54 = arith.constant dense<0.000000e+00> : vector<128xf32>
      %98 = vector.multi_reduction <add>, %97, %cst_54 [0] : vector<8x128xf32> to vector<128xf32>
      %99 = vector.shape_cast %98 : vector<128xf32> to vector<1x128xf32>
      %cst_55 = arith.constant 7.000000e+00 : f32
      %100 = vector.broadcast %cst_55 : f32 to vector<1x128xf32>
      %101 = arith.divf %99, %100 : vector<1x128xf32>
      %cst_56 = arith.constant 9.99999974E-5 : f32
      %102 = vector.broadcast %cst_56 : f32 to vector<1x128xf32>
      %103 = arith.addf %101, %102 : vector<1x128xf32>
      %104 = math.sqrt %103 : vector<1x128xf32>
      %cst_57 = arith.constant 1.000000e+00 : f32
      %105 = vector.broadcast %cst_57 : f32 to vector<1x128xf32>
      %106 = arith.subf %105, %104 : vector<1x128xf32>
      %cst_58 = arith.constant 0.000000e+00 : f32
      %107 = vector.broadcast %cst_58 : f32 to vector<1x128xf32>
      %108 = arith.maximumf %106, %107 : vector<1x128xf32>
      %109 = vector.shape_cast %108 : vector<1x128xf32> to vector<1x1x128xf32>
      %cst_59 = arith.constant dense<0.000000e+00> : vector<1xf32>
      %110 = vector.multi_reduction <add>, %109, %cst_59 [1, 2] : vector<1x1x128xf32> to vector<1xf32>
      %111 = vector.shape_cast %110 : vector<1xf32> to vector<1x1x1xf32>
      %112 = vector.extract %111[0, 0, 0] : f32 from vector<1x1x1xf32>
      %cst_60 = arith.constant 1.280000e+02 : f32
      %113 = arith.divf %112, %cst_60 : f32
      %114 = arith.truncf %96 : vector<8x128xf32> to vector<8x128xbf16>
      %cst_61 = arith.constant dense<0.000000e+00> : vector<8x8xf32>
      %115 = tpu.matmul %114, %114, %cst_61 {dimension_numbers = #tpu.dot_dimension_numbers<[1], [1], [0], [0], [0, 0, 1, 0], [], []>} : vector<8x128xbf16>, vector<8x128xbf16>, vector<8x8xf32> -> vector<8x8xf32>
      %116 = arith.mulf %115, %115 : vector<8x8xf32>
      %117 = vector.shape_cast %116 : vector<8x8xf32> to vector<1x8x8xf32>
      %cst_62 = arith.constant dense<0.000000e+00> : vector<1xf32>
      %118 = vector.multi_reduction <add>, %117, %cst_62 [1, 2] : vector<1x8x8xf32> to vector<1xf32>
      %119 = vector.shape_cast %118 : vector<1xf32> to vector<1x1x1xf32>
      %120 = vector.extract %119[0, 0, 0] : f32 from vector<1x1x1xf32>
      %cst_63 = arith.constant 4.900000e+01 : f32
      %121 = arith.divf %120, %cst_63 : f32
      %122 = arith.mulf %101, %101 : vector<1x128xf32>
      %123 = vector.shape_cast %122 : vector<1x128xf32> to vector<1x1x128xf32>
      %cst_64 = arith.constant dense<0.000000e+00> : vector<1xf32>
      %124 = vector.multi_reduction <add>, %123, %cst_64 [1, 2] : vector<1x1x128xf32> to vector<1xf32>
      %125 = vector.shape_cast %124 : vector<1xf32> to vector<1x1x1xf32>
      %126 = vector.extract %125[0, 0, 0] : f32 from vector<1x1x1xf32>
      %127 = arith.subf %121, %126 : f32
      %cst_65 = arith.constant 1.280000e+02 : f32
      %128 = arith.divf %127, %cst_65 : f32
      %c0_i32_66 = arith.constant 0 : i32
      %129 = arith.cmpi eq, %arg0, %c0_i32_66 : i32
      %130 = arith.extui %129 : i1 to i32
      %c0_i32_67 = arith.constant 0 : i32
      %131 = arith.cmpi ne, %130, %c0_i32_67 : i32
      scf.if %131 {
        %c0_70 = arith.constant 0 : index
        %c0_71 = arith.constant 0 : index
        %135 = vector.load %arg18[%c0_70, %c0_71] : memref<8x128xf32, #tpu.memory_space<vmem>>, vector<8x128xf32>
        tpu.vector_store %arg18[%c0_70, %c0_71], %90 {strides = array<i32>} : memref<8x128xf32, #tpu.memory_space<vmem>>, vector<8x128xf32>,
        %c1 = arith.constant 1 : index
        %136 = memref.load %arg19[%c1] : memref<3xf32, #tpu.memory_space<smem>>
        memref.store %113, %arg19[%c1] : memref<3xf32, #tpu.memory_space<smem>>
        %c2 = arith.constant 2 : index
        %137 = memref.load %arg19[%c2] : memref<3xf32, #tpu.memory_space<smem>>
        memref.store %128, %arg19[%c2] : memref<3xf32, #tpu.memory_space<smem>>
      } else {
      }
      %c1_i32_68 = arith.constant 1 : i32
      %132 = arith.cmpi eq, %arg0, %c1_i32_68 : i32
      %133 = arith.extui %132 : i1 to i32
      %c0_i32_69 = arith.constant 0 : i32
      %134 = arith.cmpi ne, %133, %c0_i32_69 : i32
      scf.if %134 {
        %c0_70 = arith.constant 0 : index
        %c0_71 = arith.constant 0 : index
        %135 = vector.load %arg18[%c0_70, %c0_71] : memref<8x128xf32, #tpu.memory_space<vmem>>, vector<8x128xf32>
        %136 = arith.subf %90, %135 : vector<8x128xf32>
        %137 = arith.mulf %136, %136 : vector<8x128xf32>
        %138 = vector.shape_cast %137 : vector<8x128xf32> to vector<1x8x128xf32>
        %cst_72 = arith.constant dense<0.000000e+00> : vector<1xf32>
        %139 = vector.multi_reduction <add>, %138, %cst_72 [1, 2] : vector<1x8x128xf32> to vector<1xf32>
        %140 = vector.shape_cast %139 : vector<1xf32> to vector<1x1x1xf32>
        %141 = vector.extract %140[0, 0, 0] : f32 from vector<1x1x1xf32>
        %cst_73 = arith.constant 1.024000e+03 : f32
        %142 = arith.divf %141, %cst_73 : f32
        %c0_74 = arith.constant 0 : index
        %143 = memref.load %arg16[%c0_74] : memref<3xf32, #tpu.memory_space<smem>>
        memref.store %142, %arg16[%c0_74] : memref<3xf32, #tpu.memory_space<smem>>
        %c1 = arith.constant 1 : index
        %144 = memref.load %arg19[%c1] : memref<3xf32, #tpu.memory_space<smem>>
        %145 = arith.addf %144, %113 : f32
        %c1_75 = arith.constant 1 : index
        %146 = memref.load %arg16[%c1_75] : memref<3xf32, #tpu.memory_space<smem>>
        memref.store %145, %arg16[%c1_75] : memref<3xf32, #tpu.memory_space<smem>>
        %c2 = arith.constant 2 : index
        %147 = memref.load %arg19[%c2] : memref<3xf32, #tpu.memory_space<smem>>
        %148 = arith.addf %147, %128 : f32
        %c2_76 = arith.constant 2 : index
        %149 = memref.load %arg16[%c2_76] : memref<3xf32, #tpu.memory_space<smem>>
        memref.store %148, %arg16[%c2_76] : memref<3xf32, #tpu.memory_space<smem>>
      } else {
      }
    } else {
    }
    return
  }
  func.func @transform_0(%arg0: i32, %arg1: i32) -> (i32, i32, i32) {
    %c0_i32 = arith.constant 0 : i32
    %c0_i32_0 = arith.constant 0 : i32
    return %arg0, %c0_i32, %arg1 : i32, i32, i32
  }
  func.func @transform_1(%arg0: i32, %arg1: i32) -> (i32, i32) {
    %c0_i32 = arith.constant 0 : i32
    %c0_i32_0 = arith.constant 0 : i32
    return %arg1, %c0_i32 : i32, i32
  }
  func.func @transform_2(%arg0: i32, %arg1: i32) -> (i32, i32) {
    %c0_i32 = arith.constant 0 : i32
    %c0_i32_0 = arith.constant 0 : i32
    %c0_i32_1 = arith.constant 0 : i32
    return %c0_i32, %c0_i32_0 : i32, i32
  }
  func.func @transform_3(%arg0: i32, %arg1: i32) -> (i32, i32) {
    %c0_i32 = arith.constant 0 : i32
    %c0_i32_0 = arith.constant 0 : i32
    %c0_i32_1 = arith.constant 0 : i32
    return %c0_i32, %c0_i32_0 : i32, i32
  }
  func.func @transform_4(%arg0: i32, %arg1: i32) -> (i32, i32) {
    %c0_i32 = arith.constant 0 : i32
    %c0_i32_0 = arith.constant 0 : i32
    %c0_i32_1 = arith.constant 0 : i32
    return %c0_i32, %c0_i32_0 : i32, i32
  }
  func.func @transform_5(%arg0: i32, %arg1: i32) -> (i32, i32) {
    %c0_i32 = arith.constant 0 : i32
    %c0_i32_0 = arith.constant 0 : i32
    %c0_i32_1 = arith.constant 0 : i32
    return %c0_i32, %c0_i32_0 : i32, i32
  }
  func.func @transform_6(%arg0: i32, %arg1: i32) -> (i32, i32) {
    %c0_i32 = arith.constant 0 : i32
    %c0_i32_0 = arith.constant 0 : i32
    %c0_i32_1 = arith.constant 0 : i32
    return %c0_i32, %c0_i32_0 : i32, i32
  }
  func.func @transform_7(%arg0: i32, %arg1: i32) -> (i32, i32) {
    %c0_i32 = arith.constant 0 : i32
    %c0_i32_0 = arith.constant 0 : i32
    %c0_i32_1 = arith.constant 0 : i32
    return %c0_i32, %c0_i32_0 : i32, i32
  }
  func.func @transform_8(%arg0: i32, %arg1: i32) -> (i32, i32) {
    %c0_i32 = arith.constant 0 : i32
    %c0_i32_0 = arith.constant 0 : i32
    %c0_i32_1 = arith.constant 0 : i32
    return %c0_i32, %c0_i32_0 : i32, i32
  }
  func.func @transform_9(%arg0: i32, %arg1: i32) -> (i32, i32) {
    %c0_i32 = arith.constant 0 : i32
    %c0_i32_0 = arith.constant 0 : i32
    %c0_i32_1 = arith.constant 0 : i32
    return %c0_i32, %c0_i32_0 : i32, i32
  }
  func.func @transform_10(%arg0: i32, %arg1: i32) -> (i32, i32) {
    %c0_i32 = arith.constant 0 : i32
    %c0_i32_0 = arith.constant 0 : i32
    %c0_i32_1 = arith.constant 0 : i32
    return %c0_i32, %c0_i32_0 : i32, i32
  }
  func.func @transform_11(%arg0: i32, %arg1: i32) -> (i32, i32) {
    %c0_i32 = arith.constant 0 : i32
    %c0_i32_0 = arith.constant 0 : i32
    %c0_i32_1 = arith.constant 0 : i32
    return %c0_i32, %c0_i32_0 : i32, i32
  }
  func.func @transform_12(%arg0: i32, %arg1: i32) -> (i32, i32) {
    %c0_i32 = arith.constant 0 : i32
    %c0_i32_0 = arith.constant 0 : i32
    %c0_i32_1 = arith.constant 0 : i32
    return %c0_i32, %c0_i32_0 : i32, i32
  }
  func.func @transform_13(%arg0: i32, %arg1: i32) -> (i32, i32, i32) {
    %c0_i32 = arith.constant 0 : i32
    %c0_i32_0 = arith.constant 0 : i32
    %c0_i32_1 = arith.constant 0 : i32
    return %arg0, %c0_i32, %c0_i32_0 : i32, i32, i32
  }
  func.func @transform_14(%arg0: i32, %arg1: i32) -> i32 {
    %c0_i32 = arith.constant 0 : i32
    %c0_i32_0 = arith.constant 0 : i32
    return %c0_i32 : i32
  }
}

</mosaic_0001>

<bundles_post_ra>
// kernel: vicreg_forward.1
= control target key start
LH: loop header
LB: loop body
LE: loop exit
PB: predicated region body
PF: predicated region fallthrough
CT: control target
= control target key end

     0   :  { %s2300_s0 = inlined_call_operand.vmem [shape: f32[2,8,1024], index: 0, kind: input, shape index: {}]   ;;  %s2301_s1 = inlined_call_operand.vmem [shape: bf16[1024,128], index: 1, kind: input, shape index: {}]   ;;  %s2302_s2 = inlined_call_operand.vmem [shape: f32[1,128], index: 2, kind: input, shape index: {}]   ;;  %s2303_s3 = inlined_call_operand.vmem [shape: bf16[128,128], index: 3, kind: input, shape index: {}]   ;;  %s2304_s4 = inlined_call_operand.vmem [shape: f32[1,128], index: 4, kind: input, shape index: {}]   ;;  %s2305_s5 = inlined_call_operand.vmem [shape: f32[1,128], index: 5, kind: input, shape index: {}]   ;;  %s2306_s6 = inlined_call_operand.vmem [shape: f32[1,128], index: 6, kind: input, shape index: {}]   ;;  %s2307_s7 = inlined_call_operand.vmem [shape: bf16[128,128], index: 7, kind: input, shape index: {}]   ;;  %s2308_s8 = inlined_call_operand.vmem [shape: f32[1,128], index: 8, kind: input, shape index: {}]   ;;  %s2309_s9 = inlined_call_operand.vmem [shape: f32[1,128], index: 9, kind: input, shape index: {}]   ;;  %s2310_s10 = inlined_call_operand.vmem [shape: f32[1,128], index: 10, kind: input, shape index: {}]   ;;  %s2311_s11 = inlined_call_operand.vmem [shape: bf16[128,128], index: 11, kind: input, shape index: {}]   ;;  %s2312_s12 = inlined_call_operand.vmem [shape: f32[1,128], index: 12, kind: input, shape index: {}]   ;;  %s2313_s13 = inlined_call_operand.vmem [shape: f32[2,8,128], index: 13, kind: output, shape index: {0}]   ;;  %s2314_s14 = inlined_call_operand.vmem [shape: f32[3], index: 14, kind: output, shape index: {1}]  }
   0x1   :  { %2319 = sst [smem:[#allocation14_spill]] %s2314_s14 }
   0x2   :  { %20 = vsyncpa [#allocation6], 0  ;;  %s2030_s29 = smov 0   ;;  %s2032_s30 = smov 0  }
   0x3   :  { %s2034_s15 = smov 0   ;;  %s2036_s16 = smov 0  }
   0x4   :  { %s2038_s17 = smov 0  }
   0x5 LB: > { %2320 = sst [smem:[#allocation8_spill]] %s1937_s30  ;;  %s35_s19 = sadd.s32 1, %s1941_s15  ;;  %s1949_s17 = sphi %s2038_s17, %s26_s17   ;;  %s1945_s16 = sphi %s2036_s16, %s2336_s16   ;;  %s1941_s15 = sphi %s2034_s15, %s2335_s15   ;;  %s1937_s30 = sphi %s2032_s30, %s2334_s30   ;;  %s1933_s29 = sphi %s2030_s29, %s2333_s29  }
   0x6   : > { %2321 = sst [smem:[#allocation9_spill]] %s1941_s15  ;;  %p36_p0 = scmp.ge.s32.totalorder %s35_s19, 2 }
   0x7   : > { %2322 = sst [smem:[#allocation10_spill]] %s1945_s16  ;;  %s38_s20 = sadd.s32 1, %s1945_s16 }
   0x8   : > { %2323 = sst [smem:[#allocation11_spill]] %s1949_s17  ;;  %p1553_p1 = scmp.ge.s32.totalorder %s1949_s17, 1 }
   0x9   : > { %p441_p2 = scmp.lt.s32.totalorder %s1949_s17, 5  ;;  %s2338_s19 = smov (%p36_p0, %s35_s19), 0 }
   0xa   : > { %2324 = sst [smem:[#allocation12_spill]] %s2338_s19  ;;  %s2340_s20 = smov (!%p36_p0, %s38_s20), %s1945_s16 }
   0xb   : > { %p442_p3 = pnand %p1553_p1, %p441_p2  ;;  %p40_p4 = scmp.ge.s32.totalorder %s2340_s20, 2 }
   0xc   : > { %s1554_s21 = sshll.u32 (!%p442_p3), %s1933_s29, 2  ;;  %p496_p5 = scmp.lt.s32.totalorder (!%p442_p3), %s1937_s30, 1 }
   0xd   : > { %s2342_s20 = smov (%p40_p4, %s2340_s20), 0  ;;  %445 = sbr.rel (%p442_p3) target bundleno = 1742 (0x6ce), region = 72 }
   0xe   : > { %2325 = sst [smem:[#allocation13_spill]] %s2342_s20  ;;  %p498_p6 = scmp.lt.s32.totalorder (!%p442_p3), %s1554_s21, 7 }
   0xf   : > { %s1557_s22 = sshll.u32 (!%p442_p3), %s1933_s29, 6  ;;  %p1560_p8 = scmp.ne.s32.totalorder (!%p442_p3), %s1933_s29, 0 }
  0x10   : > { %p506_p7 = scmp.lt.s32.totalorder (!%p442_p3), %s1557_s22, 127 }
  0x14   : > { %s497_s23 = scalar_select %p496_p5, %s1937_s30, 1 }
  0x15   : > { %s2344_s21 = smov (!%p498_p6, %s1554_s21), 7  ;;  %s2346_s22 = smov (!%p506_p7, %s1557_s22), 127 }
  0x16   : > { %s1555_s24 = sshll.u32 %s497_s23, 3  ;;  %s1558_s15 = sshll.u32 %s2346_s22, 2  ;;  %v1951_v0 = vmov (!%p1560_p8), 0.0  }
  0x17   : > { %s501_s25 = sadd.s32 %s1555_s24, %s2344_s21  ;;  %s2072_s28 = scalar_lea.vmem %s2313_s13, %s1555_s24  ;;  %520 = vst [vmem:[#allocation2] sm:$0xff] (!%p1560_p8), %v1951_v0 }
  0x18   : > { %s1556_s18 = sshll.u32 %s501_s25, 3  ;;  %s2082_s30 = scalar_lea.vmem %s2301_s1, %s1558_s15 }
  0x19   : > { %s2077_s16 = scalar_lea.vmem %s2300_s0, %s1556_s18  ;;  %519 = sbr.rel (%p1560_p8) target bundleno = 32 (0x20), region = 76 }
  0x20 PF: > { %v1831_v1 = vld [vmem:[%s2082_s30 + $0x40] sm:$0xff]   ;;  %v1835_v5 = vld [vmem:[%s2082_s30 + $0x48] sm:$0xff]   ;;  %v1839_v9 = vld [vmem:[%s2082_s30 + $0x50] sm:$0xff]   ;;  %p1593_p9 = scmp.ne.s32.totalorder %s1933_s29, 1 }
  0x21   : > { %v1832_v2 = vld [vmem:[%s2082_s30 + $0xc0] sm:$0xff]   ;;  %1634 = vmatprep.subr.bf16.mxu0 %v1831_v1  ;;  %v1836_v6 = vld [vmem:[%s2082_s30 + $0xc8] sm:$0xff]   ;;  %v1840_v10 = vld [vmem:[%s2082_s30 + $0xd0] sm:$0xff]   ;;  %v1952_v55 = vmov (!%p1593_p9), 0.0   ;;  %vm1953_vm0 = vmmov (!%p1593_p9), 0   ;;  %vm1318_vm1 = vcmask (!%p1593_p9), 1040384  }
  0x22   : > { %v1833_v3 = vld [vmem:[%s2082_s30] sm:$0xff]   ;;  %1656 = vmatprep.subr.bf16.mxu1 %v1832_v2  ;;  %v1837_v7 = vld [vmem:[%s2082_s30 + $0x8] sm:$0xff]   ;;  %v1841_v11 = vld [vmem:[%s2082_s30 + $0x10] sm:$0xff]   ;;  %vm1374_vm4 = vcmask (!%p1593_p9), 64512  }
  0x23   : > { %v1834_v4 = vld [vmem:[%s2082_s30 + $0x80] sm:$0xff]   ;;  %1635 = vmatpush3.bf16.msra.mxu0 %v1833_v3  ;;  %v1838_v8 = vld [vmem:[%s2082_s30 + $0x88] sm:$0xff]   ;;  %v1842_v12 = vld [vmem:[%s2082_s30 + $0x90] sm:$0xff]  }
  0x24   : > { %1657 = vmatpush3.bf16.msra.mxu1 %v1834_v4  ;;  %1636 = vmatprep.subr.bf16.mxu0 %v1835_v5  ;;  %v1843_v13 = vld [vmem:[%s2082_s30 + $0x58] sm:$0xff]   ;;  %v1847_v17 = vld [vmem:[%s2082_s30 + $0x60] sm:$0xff]   ;;  %v1851_v21 = vld [vmem:[%s2082_s30 + $0x68] sm:$0xff]  }
  0x25   : > { %1658 = vmatprep.subr.bf16.mxu1 %v1836_v6  ;;  %v1844_v14 = vld [vmem:[%s2082_s30 + $0xd8] sm:$0xff]   ;;  %v1848_v18 = vld [vmem:[%s2082_s30 + $0xe0] sm:$0xff]   ;;  %v1852_v22 = vld [vmem:[%s2082_s30 + $0xe8] sm:$0xff]  }
  0x26   : > { %v1845_v15 = vld [vmem:[%s2082_s30 + $0x18] sm:$0xff]   ;;  %v1849_v19 = vld [vmem:[%s2082_s30 + $0x20] sm:$0xff]   ;;  %v1853_v23 = vld [vmem:[%s2082_s30 + $0x28] sm:$0xff]  }
  0x27   : > { %1637 = vmatpush3.bf16.msra.mxu0 %v1837_v7  ;;  %v1846_v16 = vld [vmem:[%s2082_s30 + $0x98] sm:$0xff]   ;;  %v1850_v20 = vld [vmem:[%s2082_s30 + $0xa0] sm:$0xff]   ;;  %v1854_v24 = vld [vmem:[%s2082_s30 + $0xa8] sm:$0xff]  }
  0x28   : > { %1659 = vmatpush3.bf16.msra.mxu1 %v1838_v8  ;;  %1638 = vmatprep.subr.bf16.mxu0 %v1839_v9  ;;  %v1855_v25 = vld [vmem:[%s2082_s30 + $0x70] sm:$0xff]   ;;  %v1859_v29 = vld [vmem:[%s2082_s30 + $0x78] sm:$0xff]   ;;  %v522_v33 = vld [vmem:[%s2077_s16 + $0x8] sm:$0xff] }
  0x29   : > { %1660 = vmatprep.subr.bf16.mxu1 %v1840_v10  ;;  %v1856_v26 = vld [vmem:[%s2082_s30 + $0xf0] sm:$0xff]   ;;  %v1860_v30 = vld [vmem:[%s2082_s30 + $0xf8] sm:$0xff]   ;;  %v521_v35 = vld [vmem:[%s2077_s16] sm:$0xff]  ;;  %v526_v36 = vpack.c.bf16 %v522_v33, %v522_v33 }
  0x2a   : > { %v1857_v27 = vld [vmem:[%s2082_s30 + $0x30] sm:$0xff]   ;;  %v1861_v31 = vld [vmem:[%s2082_s30 + $0x38] sm:$0xff]   ;;  %v525_v38 = vpack.c.bf16 %v521_v35, %v521_v35  ;;  %v529_v49 = vld [vmem:[#allocation2] sm:$0xff] }
  0x2b   : > { %1639 = vmatpush3.bf16.msra.mxu0 %v1841_v11  ;;  %v1858_v28 = vld [vmem:[%s2082_s30 + $0xb0] sm:$0xff]   ;;  %v1862_v32 = vld [vmem:[%s2082_s30 + $0xb8] sm:$0xff]   ;;  %818 = vmatprep.mubr.bf16.mxu0 %v526_v36  ;;  %v1863_v54 = vld [vmem:[%s2303_s3] sm:$0xff] (!%p1593_p9)  }
  0x2c   : > { %1661 = vmatpush3.bf16.msra.mxu1 %v1842_v12  ;;  %1640 = vmatprep.subr.bf16.mxu0 %v1843_v13  ;;  %v524_v34 = vld [vmem:[%s2077_s16 + $0x18] sm:$0xff]  ;;  %v523_v39 = vld [vmem:[%s2077_s16 + $0x10] sm:$0xff]  ;;  %v1864_v56 = vld [vmem:[%s2303_s3 + $0x8] sm:$0xff] (!%p1593_p9)   ;;  %s2326_s16 = sld [smem:[#allocation8_spill]] (!%p1593_p9) }
  0x2d   : > { %1662 = vmatprep.subr.bf16.mxu1 %v1844_v14  ;;  %v528_v37 = vpack.c.bf16 %v524_v34, %v524_v34  ;;  %v527_v40 = vpack.c.bf16 %v523_v39, %v523_v39  ;;  %v1865_v57 = vld [vmem:[%s2303_s3 + $0x10] sm:$0xff] (!%p1593_p9)   ;;  %v1866_v58 = vld [vmem:[%s2303_s3 + $0x18] sm:$0xff] (!%p1593_p9)   ;;  %v1594_v60 = vld [vmem:[%s2302_s2] ss:$0 sm:$0xff] (!%p1593_p9) }
  0x2e   : > { %v1867_v62 = vld [vmem:[%s2303_s3 + $0x20] sm:$0xff] (!%p1593_p9)   ;;  %v1868_v63 = vld [vmem:[%s2303_s3 + $0x28] sm:$0xff] (!%p1593_p9)   ;;  %v1869_v0 = vld [vmem:[%s2303_s3 + $0x30] sm:$0xff] (!%p1593_p9)  }
  0x2f   : > { %1641 = vmatpush3.bf16.msra.mxu0 %v1845_v15  ;;  %858 = vmatprep.mubr.bf16.mxu1 %v528_v37  ;;  %v1870_v1 = vld [vmem:[%s2303_s3 + $0x38] sm:$0xff] (!%p1593_p9)   ;;  %v1871_v3 = vld [vmem:[%s2307_s7] sm:$0xff] (!%p1593_p9)   ;;  %v1872_v4 = vld [vmem:[%s2307_s7 + $0x8] sm:$0xff] (!%p1593_p9)  }
  0x30   : > { %1663 = vmatpush3.bf16.msra.mxu1 %v1846_v16  ;;  %1642 = vmatprep.subr.bf16.mxu0 %v1847_v17  ;;  %v1873_v5 = vld [vmem:[%s2307_s7 + $0x10] sm:$0xff] (!%p1593_p9)   ;;  %v1874_v6 = vld [vmem:[%s2307_s7 + $0x18] sm:$0xff] (!%p1593_p9)   ;;  %v1875_v7 = vld [vmem:[%s2307_s7 + $0x20] sm:$0xff] (!%p1593_p9)  }
  0x31   : > { %1664 = vmatprep.subr.bf16.mxu1 %v1848_v18  ;;  %v1876_v8 = vld [vmem:[%s2307_s7 + $0x28] sm:$0xff] (!%p1593_p9)   ;;  %v1877_v9 = vld [vmem:[%s2307_s7 + $0x30] sm:$0xff] (!%p1593_p9)   ;;  %v1878_v10 = vld [vmem:[%s2307_s7 + $0x38] sm:$0xff] (!%p1593_p9)  }
  0x32   : > { %v1595_v11 = vld [vmem:[%s2304_s4] ss:$0 sm:$0xff] (!%p1593_p9)  ;;  %p1626_p10 = scmp.ne.s32.totalorder (!%p1593_p9), %s2326_s16, 0 }
  0x33   : > { %1643 = vmatpush3.bf16.msra.mxu0 %v1849_v19  ;;  %v1604_v35 = vld [vmem:[%s2305_s5] ss:$0 sm:$0xff] (!%p1593_p9) }
  0x34   : > { %1665 = vmatpush3.bf16.msra.mxu1 %v1850_v20  ;;  %1644 = vmatprep.subr.bf16.mxu0 %v1851_v21  ;;  %v1605_v37 = vld [vmem:[%s2306_s6] ss:$0 sm:$0xff] (!%p1593_p9) }
  0x35   : > { %1666 = vmatprep.subr.bf16.mxu1 %v1852_v22 }
  0x37   : > { %1645 = vmatpush3.bf16.msra.mxu0 %v1853_v23 }
  0x38   : > { %1667 = vmatpush3.bf16.msra.mxu1 %v1854_v24  ;;  %1646 = vmatprep.subr.bf16.mxu0 %v1855_v25 }
  0x39   : > { %1668 = vmatprep.subr.bf16.mxu1 %v1856_v26 }
  0x3b   : > { %1647 = vmatpush3.bf16.msra.mxu0 %v1857_v27 }
  0x3c   : > { %1669 = vmatpush3.bf16.msra.mxu1 %v1858_v28  ;;  %1648 = vmatprep.subr.bf16.mxu0 %v1859_v29 }
  0x3d   : > { %1670 = vmatprep.subr.bf16.mxu1 %v1860_v30 }
  0x3f   : > { %1649 = vmatpush3.bf16.msra.mxu0 %v1861_v31 }
  0x40   : > { %1671 = vmatpush3.bf16.msra.mxu1 %v1862_v32  ;;  %1707 = vmatprep.subr.bf16.mxu0 (!%p1593_p9), %v1952_v55 }
  0x41   : > { %1727 = vmatprep.subr.bf16.mxu1 (!%p1593_p9), %v1952_v55 }
  0x42   : > { %819 = vmatmul.mubr.bf16.vlgmr.msra.gmra.mrb[0].mxu0 %v525_v38 }
  0x43   : > { %859 = vmatmul.mubr.bf16.vlgmr.msra.gmra.mrb[0].mxu1 %v527_v40  ;;  %1708 = vmatpush3.bf16.msra.mxu0 (!%p1593_p9), %v1863_v54 }
  0x44   : > { %1723 = vmatprep.mubr.msk.bf16.mxu0 (!%p1593_p9), %vm1953_vm0, %v1952_v55  ;;  %1709 = vmatprep.subr.bf16.mxu0 (!%p1593_p9), %v1952_v55 }
  0x45   : > { %1743 = vmatprep.mubr.msk.bf16.mxu1 (!%p1593_p9), %vm1953_vm0, %v1952_v55  ;;  %1728 = vmatpush3.bf16.msra.mxu1 (!%p1593_p9), %v1871_v3 }
  0x46   : > { %1729 = vmatprep.subr.bf16.mxu1 (!%p1593_p9), %v1952_v55 }
  0x47   : > { %1710 = vmatpush3.bf16.msra.mxu0 (!%p1593_p9), %v1864_v56 }
  0x48   : > { %1711 = vmatprep.subr.bf16.mxu0 (!%p1593_p9), %v1952_v55 }
  0x49   : > { %1730 = vmatpush3.bf16.msra.mxu1 (!%p1593_p9), %v1872_v4 }
  0x4a   : > { %1731 = vmatprep.subr.bf16.mxu1 (!%p1593_p9), %v1952_v55 }
  0x4b   : > { %1712 = vmatpush3.bf16.msra.mxu0 (!%p1593_p9), %v1865_v57 }
  0x4c   : > { %1713 = vmatprep.subr.bf16.mxu0 (!%p1593_p9), %v1952_v55 }
  0x4d   : > { %1732 = vmatpush3.bf16.msra.mxu1 (!%p1593_p9), %v1873_v5 }
  0x4e   : > { %1733 = vmatprep.subr.bf16.mxu1 (!%p1593_p9), %v1952_v55 }
  0x4f   : > { %1714 = vmatpush3.bf16.msra.mxu0 (!%p1593_p9), %v1866_v58 }
  0x50   : > { %1715 = vmatprep.subr.bf16.mxu0 (!%p1593_p9), %v1952_v55 }
  0x51   : > { %1734 = vmatpush3.bf16.msra.mxu1 (!%p1593_p9), %v1874_v6 }
  0x52   : > { %1735 = vmatprep.subr.bf16.mxu1 (!%p1593_p9), %v1952_v55 }
  0x53   : > { %1716 = vmatpush3.bf16.msra.mxu0 (!%p1593_p9), %v1867_v62 }
  0x54   : > { %1717 = vmatprep.subr.bf16.mxu0 (!%p1593_p9), %v1952_v55 }
  0x55   : > { %1736 = vmatpush3.bf16.msra.mxu1 (!%p1593_p9), %v1875_v7 }
  0x56   : > { %1737 = vmatprep.subr.bf16.mxu1 (!%p1593_p9), %v1952_v55 }
  0x57   : > { %1718 = vmatpush3.bf16.msra.mxu0 (!%p1593_p9), %v1868_v63 }
  0x58   : > { %1719 = vmatprep.subr.bf16.mxu0 (!%p1593_p9), %v1952_v55 }
  0x59   : > { %1738 = vmatpush3.bf16.msra.mxu1 (!%p1593_p9), %v1876_v8 }
  0x5a   : > { %1739 = vmatprep.subr.bf16.mxu1 (!%p1593_p9), %v1952_v55 }
  0x5b   : > { %1720 = vmatpush3.bf16.msra.mxu0 (!%p1593_p9), %v1869_v0 }
  0x5c   : > { %1721 = vmatprep.subr.bf16.mxu0 (!%p1593_p9), %v1952_v55 }
  0x5d   : > { %1740 = vmatpush3.bf16.msra.mxu1 (!%p1593_p9), %v1877_v9 }
  0x5e   : > { %1741 = vmatprep.subr.bf16.mxu1 (!%p1593_p9), %v1952_v55 }
  0x5f   : > { %1722 = vmatpush3.bf16.msra.mxu0 (!%p1593_p9), %v1870_v1 }
  0x60   : > { %1747 = vmatprep.subr.bf16.mxu0 (!%p1593_p9), %v1952_v55 }
  0x61   : > { %1742 = vmatpush3.bf16.msra.mxu1 (!%p1593_p9), %v1878_v10  ;;  %v1615_v10 = vld [vmem:[%s2309_s9] ss:$0 sm:$0xff] (!%p1593_p9) }
  0x62   : > { %1767 = vmatprep.subr.bf16.mxu1 (!%p1593_p9), %v1952_v55 }
 0x115   : > { %v1650_v41 = vpop.f32.mrb[0].mxu0 }
 0x116   : > { %v1672_v42 = vpop.f32.mrb[0].mxu1  ;;  %v1651_v43 = vpop.f32.mrb[1].mxu0 }
 0x117   : > { %v1673_v44 = vpop.f32.mrb[1].mxu1  ;;  %v1652_v45 = vadd.f32 %v1651_v43, %v1650_v41  ;;  %v1653_v47 = vpop.f32.mrb[2].mxu0  ;;  %v1880_v43 = vld [vmem:[%s2311_s11 + $0x8] sm:$0xff] (!%p1593_p9)  }
 0x118   : > { %v1674_v46 = vadd.f32 %v1673_v44, %v1672_v42  ;;  %v1675_v48 = vpop.f32.mrb[2].mxu1  ;;  %v1654_v50 = vpop.f32.mrb[3].mxu0  ;;  %871 = sbr.rel (%p1593_p9) target bundleno = 1720 (0x6b8), region = 80  ;;  %v1879_v42 = vld [vmem:[%s2311_s11] sm:$0xff] (!%p1593_p9)   ;;  %v1881_v44 = vld [vmem:[%s2311_s11 + $0x10] sm:$0xff] (!%p1593_p9)   ;;  %v1884_v47 = vld [vmem:[%s2311_s11 + $0x28] sm:$0xff] (!%p1593_p9)  }
 0x119   : > { %v1676_v51 = vpop.f32.mrb[3].mxu1  ;;  %v1885_v48 = vld [vmem:[%s2311_s11 + $0x30] sm:$0xff] (!%p1593_p9)   ;;  %v1606_v50 = vld [vmem:[%s2308_s8] ss:$0 sm:$0xff] (!%p1593_p9) }
 0x11a   : > { %v861_v52 = vadd.f32 %v1674_v46, %v1652_v45  ;;  %v1882_v45 = vld [vmem:[%s2311_s11 + $0x18] sm:$0xff] (!%p1593_p9)   ;;  %v1883_v46 = vld [vmem:[%s2311_s11 + $0x20] sm:$0xff] (!%p1593_p9)  }
 0x11c   : > { %v866_v53 = vadd.f32 %v861_v52, %v529_v49  ;;  %v1886_v49 = vld [vmem:[%s2311_s11 + $0x38] sm:$0xff] (!%p1593_p9)  }
 0x11e   : > { %867 = vst [vmem:[#allocation2] sm:$0xff] %v866_v53 }
 0x125   : > { %v872_v59 = vld [vmem:[#allocation2] sm:$0xff] }
 0x126   : > { %v880_v61 = vadd.f32 %v1594_v60, %v872_v59 }
 0x128   : > { %881 = vst [vmem:[%s2072_s28] sm:$0xff] %v880_v61  ;;  %v882_v2 = vpack.c.bf16 %v880_v61, %v880_v61 }
 0x12a   : > { %1724 = vmatmul.mubr.bf16.vlgmr.msra.gmra.mrb[0].mxu0 %v882_v2 }
 0x12b   : > { %1763 = vmatprep.mubr.msk.bf16.mxu0 %vm1953_vm0, %v1952_v55  ;;  %1748 = vmatpush3.bf16.msra.mxu0 %v1879_v42 }
 0x12c   : > { %1749 = vmatprep.subr.bf16.mxu0 %v1952_v55 }
 0x12f   : > { %1750 = vmatpush3.bf16.msra.mxu0 %v1880_v43 }
 0x130   : > { %1751 = vmatprep.subr.bf16.mxu0 %v1952_v55 }
 0x133   : > { %1752 = vmatpush3.bf16.msra.mxu0 %v1881_v44 }
 0x134   : > { %1753 = vmatprep.subr.bf16.mxu0 %v1952_v55 }
 0x137   : > { %1754 = vmatpush3.bf16.msra.mxu0 %v1882_v45 }
 0x138   : > { %1755 = vmatprep.subr.bf16.mxu0 %v1952_v55 }
 0x13b   : > { %1756 = vmatpush3.bf16.msra.mxu0 %v1883_v46 }
 0x13c   : > { %1757 = vmatprep.subr.bf16.mxu0 %v1952_v55 }
 0x13f   : > { %1758 = vmatpush3.bf16.msra.mxu0 %v1884_v47 }
 0x140   : > { %1759 = vmatprep.subr.bf16.mxu0 %v1952_v55 }
 0x143   : > { %1760 = vmatpush3.bf16.msra.mxu0 %v1885_v48 }
 0x144   : > { %1761 = vmatprep.subr.bf16.mxu0 %v1952_v55 }
 0x147   : > { %1762 = vmatpush3.bf16.msra.mxu0 %v1886_v49 }
 0x1fd   : > { %v988_v12 = vpop.f32.mrb[0].mxu0 }
 0x1fe   : > { %v989_v13 = vadd.f32 %v1595_v11, %v988_v12  ;;  %v1725_v14 = vpop.f32.mrb[1].mxu0  ;;  %v1616_v12 = vld [vmem:[%s2310_s10] ss:$0 sm:$0xff] }
 0x1ff   : > { %v991_v15 = vpop.f32.mrb[2].mxu0 }
 0x200   : > { %v996_v16 = vrot.slane %v989_v13, 4  ;;  %v1726_v17 = vpop.f32.mrb[3].mxu0 }
 0x201   : > { %v1617_v17 = vld [vmem:[%s2312_s12] ss:$0 sm:$0xff] }
 0x202   : > { %v997_v18 = vadd.f32 %v996_v16, %v989_v13 }
 0x204   : > { %v998_v19 = vrot.slane %v997_v18, 2 }
 0x206   : > { %v999_v20 = vadd.f32 %v998_v19, %v997_v18 }
 0x208   : > { %v1000_v21 = vrot.slane %v999_v20, 1 }
 0x20a   : > { %v1001_v22 = vadd.f32 %v1000_v21, %v999_v20 }
 0x20c   : > { %v1003_v23 = vmul.f32 0.125, %v1001_v22 }
 0x20e   : > { %v1004_v24 = vsub.f32 %v989_v13, %v1003_v23 }
 0x210   : > { %v1005_v25 = vmul.f32 %v1004_v24, %v1004_v24 }
 0x212   : > { %v1006_v26 = vrot.slane %v1005_v25, 4 }
 0x214   : > { %v1007_v27 = vadd.f32 %v1006_v26, %v1005_v25 }
 0x216   : > { %v1008_v28 = vrot.slane %v1007_v27, 2 }
 0x218   : > { %v1009_v29 = vadd.f32 %v1008_v28, %v1007_v27 }
 0x21a   : > { %v1010_v30 = vrot.slane %v1009_v29, 1 }
 0x21c   : > { %v1011_v31 = vadd.f32 %v1010_v30, %v1009_v29 }
 0x21e   : > { %v1012_v32 = vmul.f32 0.125, %v1011_v31 }
 0x220   : > { %v1013_v33 = vadd.f32 1e-05, %v1012_v32 }
 0x222   : > { %1887 = vrsqrt.f32 %v1013_v33 }
 0x22c   : > { %v1888_v34 = vpop.eup %1887 }
 0x22d   : > { %v1015_v36 = vmul.f32 %v1888_v34, %v1004_v24 }
 0x22f   : > { %v1022_v38 = vmul.f32 %v1604_v35, %v1015_v36 }
 0x231   : > { %v1029_v39 = vadd.f32 %v1605_v37, %v1022_v38 }
 0x233   : > { %v1030_v40 = vmax.f32 %v1029_v39, 0.0 }
 0x235   : > { %v1031_v41 = vpack.c.bf16 %v1030_v40, %v1030_v40 }
 0x237   : > { %1744 = vmatmul.mubr.bf16.vlgmr.msra.gmra.mrb[0].mxu1 %v1031_v41 }
 0x238   : > { %1769 = vmatprep.mubr.msk.bf16.mxu1 %vm1953_vm0, %v1952_v55 }
 0x30a   : > { %v1137_v51 = vpop.f32.mrb[0].mxu1 }
 0x30b   : > { %v1138_v52 = vadd.f32 %v1606_v50, %v1137_v51  ;;  %v1745_v53 = vpop.f32.mrb[1].mxu1 }
 0x30c   : > { %v1140_v54 = vpop.f32.mrb[2].mxu1 }
 0x30d   : > { %v1145_v56 = vrot.slane %v1138_v52, 4  ;;  %v1746_v57 = vpop.f32.mrb[3].mxu1 }
 0x30f   : > { %v1146_v58 = vadd.f32 %v1145_v56, %v1138_v52 }
 0x311   : > { %v1147_v59 = vrot.slane %v1146_v58, 2 }
 0x313   : > { %v1148_v60 = vadd.f32 %v1147_v59, %v1146_v58 }
 0x315   : > { %v1149_v61 = vrot.slane %v1148_v60, 1 }
 0x317   : > { %v1150_v62 = vadd.f32 %v1149_v61, %v1148_v60 }
 0x319   : > { %v1151_v63 = vmul.f32 0.125, %v1150_v62 }
 0x31b   : > { %v1152_v0 = vsub.f32 %v1138_v52, %v1151_v63 }
 0x31d   : > { %v1153_v1 = vmul.f32 %v1152_v0, %v1152_v0 }
 0x31f   : > { %v1154_v55 = vrot.slane %v1153_v1, 4 }
 0x321   : > { %v1155_v2 = vadd.f32 %v1154_v55, %v1153_v1 }
 0x323   : > { %v1156_v3 = vrot.slane %v1155_v2, 2 }
 0x325   : > { %v1157_v4 = vadd.f32 %v1156_v3, %v1155_v2 }
 0x327   : > { %v1158_v5 = vrot.slane %v1157_v4, 1 }
 0x329   : > { %v1159_v6 = vadd.f32 %v1158_v5, %v1157_v4 }
 0x32b   : > { %v1160_v7 = vmul.f32 0.125, %v1159_v6 }
 0x32d   : > { %v1161_v8 = vadd.f32 1e-05, %v1160_v7 }
 0x32f   : > { %1889 = vrsqrt.f32 %v1161_v8 }
 0x339   : > { %v1890_v9 = vpop.eup %1889 }
 0x33a   : > { %v1163_v11 = vmul.f32 %v1890_v9, %v1152_v0 }
 0x33c   : > { %v1170_v13 = vmul.f32 %v1615_v10, %v1163_v11 }
 0x33e   : > { %v1177_v14 = vadd.f32 %v1616_v12, %v1170_v13 }
 0x340   : > { %v1178_v15 = vmax.f32 %v1177_v14, 0.0 }
 0x342   : > { %v1179_v16 = vpack.c.bf16 %v1178_v15, %v1178_v15 }
 0x344   : > { %1764 = vmatmul.mubr.bf16.vlgmr.msra.gmra.mrb[4].mxu0 %v1179_v16 }
 0x417   : > { %v1285_v18 = vpop.f32.mrb[4].mxu0 }
 0x418   : > { %v2252_v19 = vadd.f32 %v1617_v17, %v1285_v18  ;;  %v1765_v20 = vpop.f32.mrb[5].mxu0 }
 0x419   : > { %v1288_v21 = vpop.f32.mrb[6].mxu0 }
 0x41a   : > { %v1291_v22 = vrot.slane %v2252_v19, 4  ;;  %v1766_v23 = vpop.f32.mrb[7].mxu0  ;;  %1407 = vst [vmem:[#allocation3] sm:$0xff] (!%p1626_p10), %v2252_v19 }
 0x41c   : > { %v1292_v24 = vadd.f32 %v1291_v22, %v2252_v19 }
 0x41e   : > { %v1293_v25 = vrot.slane %v1292_v24, 2 }
 0x420   : > { %v1294_v26 = vadd.f32 %v1293_v25, %v1292_v24 }
 0x422   : > { %v1295_v27 = vrot.slane %v1294_v26, 1 }
 0x424   : > { %v1296_v28 = vadd.f32 %v1295_v27, %v1294_v26 }
 0x426   : > { %v1297_v29 = vmul.f32 0.125, %v1296_v28 }
 0x428   : > { %v1298_v30 = vsub.f32 %v2252_v19, %v1297_v29 }
 0x42a   : > { %v1299_v31 = vmul.f32 %v1298_v30, %v1298_v30  ;;  %v1332_v32 = vpack.c.bf16 %v1298_v30, %v1298_v30 }
 0x42c   : > { %v1300_v33 = vrot.slane %v1299_v31, 4  ;;  %1768 = vmatpush3.bf16.xpose.msra.mxu1 %v1332_v32 }
 0x42e   : > { %v1301_v34 = vadd.f32 %v1300_v33, %v1299_v31 }
 0x430   : > { %v1302_v35 = vrot.slane %v1301_v34, 2 }
 0x432   : > { %v1303_v36 = vadd.f32 %v1302_v35, %v1301_v34 }
 0x433   : > { %1770 = vmatmul.mubr.bf16.vlgmr.msra.gmra.mrb[4].mxu1 %v1332_v32 }
 0x434   : > { %v1304_v37 = vrot.slane %v1303_v36, 1 }
 0x436   : > { %v1305_v38 = vadd.f32 %v1304_v37, %v1303_v36 }
 0x438   : > { %v1307_v39 = vmul.f32 0.14285715, %v1305_v38 }
 0x43a   : > { %v1388_v40 = vmul.f32 %v1307_v39, %v1307_v39  ;;  %v1308_v41 = vadd.f32 0.0001, %v1307_v39 }
 0x43c   : > { %v1389_v42 = vsel %vm1318_vm1, %v1388_v40, 0.0  ;;  %1891 = vrsqrt.f32 %v1308_v41  ;;  %vm1311_vm2 = vcmp.eq.f32.partialorder %v1308_v41, inf  ;;  %v1314_v45 = vand.u32 2147483648, %v1308_v41 }
 0x43d   : > { %1390 = vadd.xlane.f32.xlu1 %v1389_v42  ;;  %vm1313_vm3 = vcmp.eq.f32.partialorder %v1308_v41, 0.0 }
 0x446   : > { %v1892_v43 = vpop.eup %1891 }
 0x447   : > { %v1310_v44 = vmul.f32 %v1892_v43, %v1308_v41 }
 0x449   : > { %v1312_v46 = vsel %vm1311_vm2, %v1308_v41, %v1310_v44 }
 0x44a   : > { %v1315_v47 = vsel %vm1313_vm3, %v1314_v45, %v1312_v46 }
 0x44b   : > { %v1316_v48 = vsub.f32 1.0, %v1315_v47 }
 0x44d   : > { %v1317_v49 = vmax.f32 %v1316_v48, 0.0 }
 0x44f   : > { %v1319_v50 = vsel %vm1318_vm1, %v1317_v49, 0.0 }
 0x450   : > { %1320 = vadd.xlane.f32.xlu0 %v1319_v50 }
 0x4ca   : > { %v1391_v1 = vpop.xlane.xlu1 %1390 }
 0x4cb   : > { %v1392_v55 = vrot.slane %v1391_v1, 4 }
 0x4cd   : > { %v1393_v2 = vadd.f32 %v1392_v55, %v1391_v1 }
 0x4cf   : > { %v1394_v3 = vrot.slane %v1393_v2, 2 }
 0x4d1   : > { %v1395_v7 = vadd.f32 %v1394_v3, %v1393_v2 }
 0x4d3   : > { %v1396_v10 = vrot.slane %v1395_v7, 1 }
 0x4d5   : > { %v1397_v13 = vadd.f32 %v1396_v10, %v1395_v7 }
 0x4dd   : > { %v1321_v51 = vpop.xlane.xlu0 %1320 }
 0x4de   : > { %v1322_v52 = vrot.slane %v1321_v51, 4 }
 0x4e0   : > { %v1323_v53 = vadd.f32 %v1322_v52, %v1321_v51 }
 0x4e2   : > { %v1324_v54 = vrot.slane %v1323_v53, 2 }
 0x4e4   : > { %v1325_v56 = vadd.f32 %v1324_v54, %v1323_v53 }
 0x4e6   : > { %v1326_v57 = vrot.slane %v1325_v56, 1 }
 0x4e8   : > { %v1327_v58 = vadd.f32 %v1326_v57, %v1325_v56 }
 0x4ea   : > { %1773 = vpush %v1327_v58 }
 0x506   : > { %v1367_v59 = vpop.f32.mrb[4].mxu1 }
 0x507   : > { %v1373_v60 = vmul.f32 %v1367_v59, %v1367_v59  ;;  %v1771_v61 = vpop.f32.mrb[5].mxu1 }
 0x508   : > { %v1370_v62 = vpop.f32.mrb[6].mxu1 }
 0x509   : > { %v1772_v63 = vpop.f32.mrb[7].mxu1  ;;  %v1375_v0 = vsel %vm1374_vm4, %v1373_v60, 0.0 }
 0x50a   : > { %1376 = vadd.xlane.f32.xlu0 %v1375_v0 }
 0x51b   : > { %s2257_s25 = spop %1773 }
 0x51c   : > { %s1331_s26 = smul.f32 0.0078125, %s2257_s25 }
 0x51e   : > { %1409 = sst [smem:[#allocation4 + $0x1]] (!%p1626_p10), %s1331_s26 }
 0x597   : > { %v1377_v4 = vpop.xlane.xlu0 %1376 }
 0x598   : > { %v1378_v5 = vrot.slane %v1377_v4, 4 }
 0x59a   : > { %v1379_v6 = vadd.f32 %v1378_v5, %v1377_v4 }
 0x59c   : > { %v1380_v8 = vrot.slane %v1379_v6, 2 }
 0x59e   : > { %v1381_v9 = vadd.f32 %v1380_v8, %v1379_v6 }
 0x5a0   : > { %v1382_v11 = vrot.slane %v1381_v9, 1 }
 0x5a2   : > { %v1383_v12 = vadd.f32 %v1382_v11, %v1381_v9 }
 0x5a4   : > { %1775 = vpush %v1383_v12 }
 0x5a5   : > { %1777 = vpush %v1397_v13 }
 0x5d4   : > { %1406 = sbr.rel (%p1626_p10) target bundleno = 1501 (0x5dd), region = 84 }
 0x5d5   : > { %s1776_s27 = spop %1775 }
 0x5d6   : > { %s1387_s28 = smul.f32 0.020408163, %s1776_s27  ;;  %s1778_s14 = spop %1777 }
 0x5d8   : > { %s1399_s30 = ssub.f32 %s1387_s28, %s1778_s14 }
 0x5da   : > { %s1402_s15 = smul.f32 0.0078125, %s1399_s30 }
 0x5dc   : > { %1411 = sst [smem:[#allocation4 + $0x2]] %s1402_s15 }
 0x5dd PF: > { %s2327_s29 = sld [smem:[#allocation8_spill]] }
 0x5e3   : > { %p1627_p11 = scmp.ne.s32.totalorder %s2327_s29, 1 }
 0x5e4   : > { %v1416_v14 = vld [vmem:[#allocation3] sm:$0xff] (!%p1627_p11)  ;;  %s1628_s17 = sld [smem:[#allocation4 + $0x1]] (!%p1627_p11)  ;;  %s1629_s18 = sld [smem:[#allocation4 + $0x2]] (!%p1627_p11) }
 0x5e5   : > { %1415 = sbr.rel (%p1627_p11) target bundleno = 1720 (0x6b8), region = 88  ;;  %v1417_v15 = vsub.f32 (!%p1627_p11), %v2252_v19, %v1416_v14 }
 0x5e7   : > { %v1418_v16 = vmul.f32 (!%p1627_p11), %v1417_v15, %v1417_v15 }
 0x5e9   : > { %1419 = vadd.xlane.f32.xlu0 (!%p1627_p11), %v1418_v16 }
 0x5ea   : > { %s1434_s19 = sadd.f32 (!%p1627_p11), %s1628_s17, %s1331_s26 }
 0x5eb   : > { %s1438_s20 = sadd.f32 (!%p1627_p11), %s1629_s18, %s1402_s15 }
 0x5ec   : > { %1436 = sst [smem:[#allocation5 + $0x1]] %s1434_s19 }
 0x5ed   : > { %1440 = sst [smem:[#allocation5 + $0x2]] %s1438_s20 }
 0x676   : > { %v1420_v17 = vpop.xlane.xlu0 %1419 }
 0x677   : > { %v1421_v18 = vrot.slane %v1420_v17, 4 }
 0x679   : > { %v1422_v20 = vadd.f32 %v1421_v18, %v1420_v17 }
 0x67b   : > { %v1423_v21 = vrot.slane %v1422_v20, 2 }
 0x67d   : > { %v1424_v22 = vadd.f32 %v1423_v21, %v1422_v20 }
 0x67f   : > { %v1425_v23 = vrot.slane %v1424_v22, 1 }
 0x681   : > { %v1426_v24 = vadd.f32 %v1425_v23, %v1424_v22 }
 0x683   : > { %1779 = vpush %v1426_v24 }
 0x6b4   : > { %s1780_s21 = spop %1779 }
 0x6b5   : > { %s1430_s22 = smul.f32 0.0009765625, %s1780_s21 }
 0x6b7   : > { %1432 = sst [smem:[#allocation5]] %s1430_s22 }
 0x6b8 PF: > { %s2328_s23 = sld [smem:[#allocation11_spill]]  ;;  %s2331_s28 = sld [smem:[#allocation14_spill]] }
 0x6be   : > { %s2329_s24 = sadd.s32 4294967295, %s2328_s23   ;;  %s1455_s14 = sshll.u32 %s2331_s28, 4  ;;  %s1456_s14 = int_to_ptr.vmem [resolvable:$true] %s1455_s14 }
 0x6bf   : > { %p2270_p12 = scmp.eq.s32.totalorder %s2329_s24, 3  ;;  %s1893_s30 = scalar_lea.vmem %s1456_s14, 16 }
 0x6c0   : > { %p1894_p13 = scmp.ne.s32.totalorder %s1456_s14, %s1893_s30  ;;  %p1900_p2 = scmp.lt.s32.totalorder %s1456_s14, %s1456_s14 }
 0x6c1   : > { %p1901_p3 = scmp.lt.s32.totalorder %s1893_s30, %s1893_s30 }
 0x6c2   : > { %p1895_p0 = pnand %p1894_p13, %p2270_p12 }
 0x6c3   : > { %p1902_p4 = por %p1901_p3, %p1900_p2 }
 0x6c4   : > { %p1896_p1 = pneg %p1895_p0 }
 0x6c6   : > { %p1903_p5 = pnand %p1902_p4, %p1896_p1 }
 0x6c8   : > { %1906 = shalt.err (!%p1903_p5)
}
 0x6c9   : > { %s1954_s15 = smov [#allocation5]  }
 0x6ca   : > { %1782 = dma.smem_to_vmem (%p2270_p12), %s1954_s15, 16, %s1456_s14, [#allocation6]  }
 0x6cb   : > { %1928 = dma.done.wait (%p2270_p12), [#allocation6], 16  }
 0x6cc   : > { %1930 = vsyncadd (%p2270_p12), [#allocation6], 4294967280 }
 0x6cd   : > { %1463 = sfence }
 0x6ce PF: > { %s2332_s16 = sld [smem:[#allocation11_spill]]  ;;  %s2333_s29 = sld [smem:[#allocation9_spill]] }
 0x6cf   : > { %s2334_s30 = sld [smem:[#allocation10_spill]]  ;;  %s2335_s15 = sld [smem:[#allocation12_spill]] }
 0x6d4   : > { %s26_s17 = sadd.s32 1, %s2332_s16   ;;  %s2336_s16 = sld [smem:[#allocation13_spill]] }
 0x6d5   : > { %p23_p6 = scmp.ge.s32.totalorder %s26_s17, 6  }
 0x6d7   :  { %25 = sbr.rel (!%p23_p6) target bundleno = 5 (0x5), region = 135 }
 0x6de   :  { %1476 = vsyncpa [#allocation6], 1 }
 0x6df   :  { %1478 = vsyncpa [#allocation6 + $0x1], 1 }

</bundles_post_ra>
